<compile_context>
chip_gen: v5e
topology: v5e:2x2
jax: 0.10.0
libtpu: 0.0.40
codegen_flags: <defaults>
</compile_context>

<pallas_src>
import functools

import jax
import jax.numpy as jnp
from jax.experimental import pallas as pl
from jax.experimental.pallas import tpu as pltpu  # noqa: F401  (TPU backend)


# ----------------------------------------------------------------------------
# Fused kernel: title bidirectional LSTM + fc + sigmoid.
# Gate-major interleaved layout (built offline in prepare_fused_params):
#   column block [g*2H + d*H : g*2H + (d+1)*H] holds gate g (i,f,g,o) of
#   direction d (0 = forward, 1 = backward).  h / c state is (B, 2H) = [fwd|bwd].
# The frozen text branch is already folded into fcb_ref.
# ----------------------------------------------------------------------------
def _title_branch_kernel(x_ref, wih_ref, whh_ref, bias_ref, fcw_ref, fcb_ref,
                         out_ref, *, hidden, seq_len, batch):
    H = hidden
    G = 8 * H                       # fused bidirectional gate width

    # --- Off the recurrent chain: ONE dense input projection for BOTH
    # directions (their gate columns are disjoint).  (T*B, E) @ (E, 8H).
    xp = jnp.dot(x_ref[...], wih_ref[...], preferred_element_type=jnp.float32)
    w_hh = whh_ref[...]             # (2H, 8H), hoisted out of the loop
    bias = bias_ref[...]            # (1, 8H)

    # Static lane masks (plain compares only — always lower cleanly).
    lane = jax.lax.broadcasted_iota(jnp.int32, (batch, G), dimension=1)
    # forward direction owns the first H lanes of every 2H gate block
    fwd_lanes = ((lane < H)
                 | ((lane >= 2 * H) & (lane < 3 * H))
                 | ((lane >= 4 * H) & (lane < 5 * H))
                 | ((lane >= 6 * H) & (lane < 7 * H)))
    g_lanes = (lane >= 4 * H) & (lane < 6 * H)   # candidate (tanh) gate block

    # --- Pre-combine the per-step gate_x slabs (forward gate columns read
    # x[t], backward gate columns read x[T-1-t]) and fold the bias in, so the
    # serial loop below only carries h @ W_hh + gate_x -> nonlinearities.
    gate_x = []
    for t in range(seq_len):
        rf = t * batch                      # rows of x[t]       (forward dir)
        rb = (seq_len - 1 - t) * batch      # rows of x[T-1-t]   (backward dir)
        gate_x.append(
            jnp.where(fwd_lanes, xp[rf:rf + batch, :], xp[rb:rb + batch, :])
            + bias)

    h = jnp.zeros((batch, 2 * H), jnp.float32)      # [fwd | bwd]
    c = jnp.zeros((batch, 2 * H), jnp.float32)

    # Fully unrolled recurrence (seq_len is a small static constant).
    for t in range(seq_len):
        gates = gate_x[t] + jnp.dot(h, w_hh, preferred_element_type=jnp.float32)
        # Two full-width EUP pushes + one lane select instead of four narrow
        # 32-lane activations (each of which forces a lane realign).
        sig = jax.nn.sigmoid(gates)
        tnh = jnp.tanh(gates)
        act = jnp.where(g_lanes, tnh, sig)
        i_g = act[:, 0 * 2 * H:1 * 2 * H]
        f_g = act[:, 1 * 2 * H:2 * 2 * H]
        g_g = act[:, 2 * 2 * H:3 * 2 * H]
        o_g = act[:, 3 * 2 * H:4 * 2 * H]
        c = f_g * c + i_g * g_g
        h = o_g * jnp.tanh(c)

    # Dropout is identity in eval/attribution mode.
    # fc head on the VPU + lane reduce (no N=1 MXU push/pop on the tail);
    # fc_w is pre-split/pre-transposed offline and the frozen text-branch
    # contribution is already inside fcb_ref.
    logits = (jnp.sum(h * fcw_ref[...], axis=-1, keepdims=True)
              + fcb_ref[...])                                    # (B, 1)
    out_ref[...] = jax.nn.sigmoid(logits)


# ----------------------------------------------------------------------------
# Host-side wrapper: one pallas_call, everything whole-array VMEM resident.
# ----------------------------------------------------------------------------
def wrapper_title_branch_forward(fused, embedded_title_input):
    """embedded_title_input: (B, T, E) float32 -> (B, 1) probabilities."""
    B, T, E = embedded_title_input.shape
    H = fused["bias"].shape[1] // 8

    # Time-major flattened slab, row = t*B + b (contiguous per-step rows).
    # TODO(synk): at scale, produce/pre-store the title activations time-major
    # so this tiny host-side relayout disappears entirely.
    title_2d = jnp.transpose(embedded_title_input, (1, 0, 2)).reshape(T * B, E)

    # TODO(synk): for large B on v7x, add a leading batch grid axis with
    # dimension_semantics=("parallel",) so both TensorCores take half the batch.
    return pl.pallas_call(
        functools.partial(_title_branch_kernel, hidden=H, seq_len=T, batch=B),
        out_shape=jax.ShapeDtypeStruct((B, 1), jnp.float32),
    )(title_2d, fused["wih"], fused["whh"], fused["bias"],
      fused["fc_w_title"], fused["fc_b_total"])


# ----------------------------------------------------------------------------
# Parameter construction (raw per-direction weights, PyTorch gate order
# i,f,g,o) and a one-time offline fusion into the kernel's layout.
# ----------------------------------------------------------------------------
def make_raw_params(key, *, emb_dim, hidden, text_len):
    ks = jax.random.split(key, 15)
    scale = 0.1

    def w(k, shape):
        return (scale * jax.random.normal(k, shape)).astype(jnp.float32)

    H4 = 4 * hidden
    return {
        # LSTM weights stored transposed vs PyTorch: (E, 4H) / (H, 4H);
        # biases are b_ih + b_hh folded together, shape (1, 4H).
        "title_w_ih_f": w(ks[0], (emb_dim, H4)),
        "title_w_hh_f": w(ks[1], (hidden, H4)),
        "title_b_f":    w(ks[2], (1, H4)),
        "title_w_ih_b": w(ks[3], (emb_dim, H4)),
        "title_w_hh_b": w(ks[4], (hidden, H4)),
        "title_b_b":    w(ks[5], (1, H4)),
        "text_w_ih_f":  w(ks[6], (emb_dim, H4)),
        "text_w_hh_f":  w(ks[7], (hidden, H4)),
        "text_b_f":     w(ks[8], (1, H4)),
        "text_w_ih_b":  w(ks[9], (emb_dim, H4)),
        "text_w_hh_b":  w(ks[10], (hidden, H4)),
        "text_b_b":     w(ks[11], (1, H4)),
        # fc: Linear(4H -> 1), stored as (4H, 1).
        "fc_w":         w(ks[12], (4 * hidden, 1)),
        "fc_b":         w(ks[13], (1, 1)),
        # Frozen embedded text input (1, T_text, E).
        "embedded_text_input": w(ks[14], (1, text_len, emb_dim)),
    }


def _spread_gates(w, direction, hidden):
    """Place the 4 gate blocks of w (rows, 4H) into (rows, 8H) gate-major
    interleaved columns: gate g of direction d -> [g*2H+d*H : g*2H+(d+1)*H]."""
    rows = w.shape[0]
    out = jnp.zeros((rows, 8 * hidden), w.dtype)
    for g in range(4):
        dst = g * 2 * hidden + direction * hidden
        out = out.at[:, dst:dst + hidden].set(w[:, g * hidden:(g + 1) * hidden])
    return out


def _lstm_ref(x_tm, w_ih, w_hh, b, reverse):
    """Single-direction LSTM reference (PyTorch semantics, time-major input)."""
    T, B, _ = x_tm.shape
    H = w_hh.shape[0]
    h = jnp.zeros((B, H), jnp.float32)
    c = jnp.zeros((B, H), jnp.float32)
    order = range(T - 1, -1, -1) if reverse else range(T)
    for t in order:
        gates = x_tm[t] @ w_ih + h @ w_hh + b
        i = jax.nn.sigmoid(gates[:, 0:H])
        f = jax.nn.sigmoid(gates[:, H:2 * H])
        g = jnp.tanh(gates[:, 2 * H:3 * H])
        o = jax.nn.sigmoid(gates[:, 3 * H:4 * H])
        c = f * c + i * g
        h = o * jnp.tanh(c)
    return h


def prepare_fused_params(raw, hidden):
    """One-time offline re-layout + constant folding:
      * title LSTM weights -> fused gate-major bidirectional layout; the two
        directions' W_ih are summed into ONE dense (E, 8H) matrix (their gate
        columns are disjoint);
      * the frozen text branch (identical for every call / batch row in eval
        mode) is run once here and its fc contribution is folded into a single
        (1, 1) bias, so the kernel never sees the text weights or sequence;
      * fc_w is pre-split: only the title half is passed, pre-transposed to a
        (1, 2H) row for the in-kernel VPU multiply + lane-reduce head.
    """
    H = hidden
    with jax.default_matmul_precision("highest"):    # offline: accuracy is free
        wih = (_spread_gates(raw["title_w_ih_f"], 0, H)
               + _spread_gates(raw["title_w_ih_b"], 1, H))            # (E, 8H)
        whh = jnp.concatenate(
            [_spread_gates(raw["title_w_hh_f"], 0, H),
             _spread_gates(raw["title_w_hh_b"], 1, H)], axis=0)       # (2H, 8H)
        bias = (_spread_gates(raw["title_b_f"], 0, H)
                + _spread_gates(raw["title_b_b"], 1, H))              # (1, 8H)

        text_tm = jnp.transpose(raw["embedded_text_input"], (1, 0, 2))
        x_f = _lstm_ref(text_tm, raw["text_w_ih_f"], raw["text_w_hh_f"],
                        raw["text_b_f"], reverse=False)
        x_b = _lstm_ref(text_tm, raw["text_w_ih_b"], raw["text_w_hh_b"],
                        raw["text_b_b"], reverse=True)
        text_h = jnp.concatenate([x_f, x_b], axis=1)                  # (1, 2H)

        fc_w = raw["fc_w"]                                            # (4H, 1)
        fc_b_total = raw["fc_b"] + text_h @ fc_w[2 * H:4 * H, :]      # (1, 1)
        fc_w_title = jnp.transpose(fc_w[0:2 * H, :])                  # (1, 2H)

    return {"wih": wih, "whh": whh, "bias": bias,
            "fc_w_title": fc_w_title, "fc_b_total": fc_b_total}


# ----------------------------------------------------------------------------
# Pure-JAX references for verification.
# ----------------------------------------------------------------------------
def forward_reference(raw, title):
    """Per-direction reference mirroring the PyTorch module semantics."""
    B = title.shape[0]
    title_tm = jnp.transpose(title, (1, 0, 2))
    text_tm = jnp.transpose(raw["embedded_text_input"], (1, 0, 2))
    t_f = _lstm_ref(title_tm, raw["title_w_ih_f"], raw["title_w_hh_f"],
                    raw["title_b_f"], False)
    t_b = _lstm_ref(title_tm, raw["title_w_ih_b"], raw["title_w_hh_b"],
                    raw["title_b_b"], True)
    x_f = _lstm_ref(text_tm, raw["text_w_ih_f"], raw["text_w_hh_f"],
                    raw["text_b_f"], False)
    x_b = _lstm_ref(text_tm, raw["text_w_ih_b"], raw["text_w_hh_b"],
                    raw["text_b_b"], True)
    x_f = jnp.broadcast_to(x_f, (B, x_f.shape[1]))
    x_b = jnp.broadcast_to(x_b, (B, x_b.shape[1]))
    combined = jnp.concatenate([t_f, t_b, x_f, x_b], axis=1)
    return jax.nn.sigmoid(combined @ raw["fc_w"] + raw["fc_b"])


def forward_fused_layout_ref(fused, title):
    """Pure-JAX (XLA) mirror of the kernel math — same fused layout, same
    precomputed text constant.  Validates the gate/direction column mapping
    and the constant folding to float32 accuracy, independent of MXU rounding."""
    B, T, E = title.shape
    H = fused["bias"].shape[1] // 8
    x2d = jnp.transpose(title, (1, 0, 2)).reshape(T * B, E)
    xp = x2d @ fused["wih"]
    lane = jnp.arange(8 * H)[None, :]
    fwd = ((lane < H) | ((lane >= 2 * H) & (lane < 3 * H))
           | ((lane >= 4 * H) & (lane < 5 * H)) | ((lane >= 6 * H) & (lane < 7 * H)))
    h = jnp.zeros((B, 2 * H), jnp.float32)
    c = jnp.zeros((B, 2 * H), jnp.float32)
    for t in range(T):
        rf, rb = t * B, (T - 1 - t) * B
        gates = (jnp.where(fwd, xp[rf:rf + B], xp[rb:rb + B]) + fused["bias"]
                 + h @ fused["whh"])
        i = jax.nn.sigmoid(gates[:, 0:2 * H])
        f = jax.nn.sigmoid(gates[:, 2 * H:4 * H])
        g = jnp.tanh(gates[:, 4 * H:6 * H])
        o = jax.nn.sigmoid(gates[:, 6 * H:8 * H])
        c = f * c + i * g
        h = o * jnp.tanh(c)
    logits = (jnp.sum(h * fused["fc_w_title"], axis=-1, keepdims=True)
              + fused["fc_b_total"])
    return jax.nn.sigmoid(logits)


if __name__ == "__main__":
    B, T_TITLE, T_TEXT, E, H = 2, 8, 12, 16, 16

    key = jax.random.PRNGKey(0)
    k_params, k_title = jax.random.split(key)
    raw_params = make_raw_params(k_params, emb_dim=E, hidden=H, text_len=T_TEXT)
    fused_params = prepare_fused_params(raw_params, H)

    embedded_title_input = jax.random.normal(
        k_title, (B, T_TITLE, E), dtype=jnp.float32)

    out = jax.jit(wrapper_title_branch_forward)(fused_params,
                                                embedded_title_input)
    out = jax.block_until_ready(out)

    # References at full f32 matmul precision so layout errors can't hide
    # behind matmul rounding.
    with jax.default_matmul_precision("highest"):
        ref = forward_reference(raw_params, embedded_title_input)
        fused_ref = forward_fused_layout_ref(fused_params, embedded_title_input)

    assert out.shape == (B, 1), out.shape
    assert bool(jnp.all((out >= 0.0) & (out <= 1.0))), "sigmoid range violated"
    # Tight check: fused gate-major layout + precomputed text constant match
    # the per-direction reference to f32 rounding (validates the re-layout).
    assert bool(jnp.allclose(fused_ref, ref, atol=1e-5, rtol=1e-5)), (fused_ref, ref)
    # Kernel vs reference: residual is only MXU default-precision matmul
    # rounding (layout already validated exactly above).
    assert bool(jnp.allclose(out, ref, atol=5e-3, rtol=0.0)), (out, ref)
    print("KERNEL_OK")
</pallas_src>

<mosaic_0001>
module attributes {stable_mosaic.version = 11 : i64} {
  func.func @_title_branch_kernel(%arg0: memref<16x16xf32, #tpu.memory_space<vmem>>, %arg1: memref<16x128xf32, #tpu.memory_space<vmem>>, %arg2: memref<32x128xf32, #tpu.memory_space<vmem>>, %arg3: memref<1x128xf32, #tpu.memory_space<vmem>>, %arg4: memref<1x32xf32, #tpu.memory_space<vmem>>, %arg5: memref<1x1xf32, #tpu.memory_space<vmem>>, %arg6: memref<2x1xf32, #tpu.memory_space<vmem>>) attributes {dimension_semantics = [], scalar_prefetch = 0 : i64, scratch_operands = 0 : i64, tpu.core_type = #tpu.core_type<tc>} {
    %c0 = arith.constant 0 : index
    %c0_0 = arith.constant 0 : index
    %0 = vector.load %arg0[%c0, %c0_0] : memref<16x16xf32, #tpu.memory_space<vmem>>, vector<16x16xf32>
    %c0_1 = arith.constant 0 : index
    %c0_2 = arith.constant 0 : index
    %1 = vector.load %arg1[%c0_1, %c0_2] : memref<16x128xf32, #tpu.memory_space<vmem>>, vector<16x128xf32>
    %cst = arith.constant dense<0.000000e+00> : vector<16x128xf32>
    %2 = tpu.matmul %0, %1, %cst {dimension_numbers = #tpu.dot_dimension_numbers<[1], [0], [0], [1], [0, 0, 1, 1], [], []>} : vector<16x16xf32>, vector<16x128xf32>, vector<16x128xf32> -> vector<16x128xf32>
    %c0_3 = arith.constant 0 : index
    %c0_4 = arith.constant 0 : index
    %3 = vector.load %arg2[%c0_3, %c0_4] : memref<32x128xf32, #tpu.memory_space<vmem>>, vector<32x128xf32>
    %c0_5 = arith.constant 0 : index
    %c0_6 = arith.constant 0 : index
    %4 = vector.load %arg3[%c0_5, %c0_6] : memref<1x128xf32, #tpu.memory_space<vmem>>, vector<1x128xf32>
    %5 = tpu.iota {dimensions = array<i32: 1>} : vector<2x128xi32>
    %c16_i32 = arith.constant 16 : i32
    %6 = vector.broadcast %c16_i32 : i32 to vector<2x128xi32>
    %7 = arith.cmpi slt, %5, %6 : vector<2x128xi32>
    %c32_i32 = arith.constant 32 : i32
    %8 = vector.broadcast %c32_i32 : i32 to vector<2x128xi32>
    %9 = arith.cmpi sge, %5, %8 : vector<2x128xi32>
    %c48_i32 = arith.constant 48 : i32
    %10 = vector.broadcast %c48_i32 : i32 to vector<2x128xi32>
    %11 = arith.cmpi slt, %5, %10 : vector<2x128xi32>
    %12 = arith.andi %9, %11 : vector<2x128xi1>
    %13 = arith.ori %7, %12 : vector<2x128xi1>
    %c64_i32 = arith.constant 64 : i32
    %14 = vector.broadcast %c64_i32 : i32 to vector<2x128xi32>
    %15 = arith.cmpi sge, %5, %14 : vector<2x128xi32>
    %c80_i32 = arith.constant 80 : i32
    %16 = vector.broadcast %c80_i32 : i32 to vector<2x128xi32>
    %17 = arith.cmpi slt, %5, %16 : vector<2x128xi32>
    %18 = arith.andi %15, %17 : vector<2x128xi1>
    %19 = arith.ori %13, %18 : vector<2x128xi1>
    %c96_i32 = arith.constant 96 : i32
    %20 = vector.broadcast %c96_i32 : i32 to vector<2x128xi32>
    %21 = arith.cmpi sge, %5, %20 : vector<2x128xi32>
    %c112_i32 = arith.constant 112 : i32
    %22 = vector.broadcast %c112_i32 : i32 to vector<2x128xi32>
    %23 = arith.cmpi slt, %5, %22 : vector<2x128xi32>
    %24 = arith.andi %21, %23 : vector<2x128xi1>
    %25 = arith.ori %19, %24 : vector<2x128xi1>
    %c64_i32_7 = arith.constant 64 : i32
    %26 = vector.broadcast %c64_i32_7 : i32 to vector<2x128xi32>
    %27 = arith.cmpi sge, %5, %26 : vector<2x128xi32>
    %c96_i32_8 = arith.constant 96 : i32
    %28 = vector.broadcast %c96_i32_8 : i32 to vector<2x128xi32>
    %29 = arith.cmpi slt, %5, %28 : vector<2x128xi32>
    %30 = arith.andi %27, %29 : vector<2x128xi1>
    %31 = vector.extract_strided_slice %2 {offsets = [0, 0], sizes = [2, 128], strides = [1, 1]} : vector<16x128xf32> to vector<2x128xf32>
    %32 = vector.extract_strided_slice %2 {offsets = [14, 0], sizes = [2, 128], strides = [1, 1]} : vector<16x128xf32> to vector<2x128xf32>
    %33 = arith.select %25, %31, %32 : vector<2x128xi1>, vector<2x128xf32>
    %34 = vector.broadcast %4 : vector<1x128xf32> to vector<2x128xf32>
    %35 = arith.addf %33, %34 : vector<2x128xf32>
    %36 = vector.extract_strided_slice %2 {offsets = [2, 0], sizes = [2, 128], strides = [1, 1]} : vector<16x128xf32> to vector<2x128xf32>
    %37 = vector.extract_strided_slice %2 {offsets = [12, 0], sizes = [2, 128], strides = [1, 1]} : vector<16x128xf32> to vector<2x128xf32>
    %38 = arith.select %25, %36, %37 : vector<2x128xi1>, vector<2x128xf32>
    %39 = vector.broadcast %4 : vector<1x128xf32> to vector<2x128xf32>
    %40 = arith.addf %38, %39 : vector<2x128xf32>
    %41 = vector.extract_strided_slice %2 {offsets = [4, 0], sizes = [2, 128], strides = [1, 1]} : vector<16x128xf32> to vector<2x128xf32>
    %42 = vector.extract_strided_slice %2 {offsets = [10, 0], sizes = [2, 128], strides = [1, 1]} : vector<16x128xf32> to vector<2x128xf32>
    %43 = arith.select %25, %41, %42 : vector<2x128xi1>, vector<2x128xf32>
    %44 = vector.broadcast %4 : vector<1x128xf32> to vector<2x128xf32>
    %45 = arith.addf %43, %44 : vector<2x128xf32>
    %46 = vector.extract_strided_slice %2 {offsets = [6, 0], sizes = [2, 128], strides = [1, 1]} : vector<16x128xf32> to vector<2x128xf32>
    %47 = vector.extract_strided_slice %2 {offsets = [8, 0], sizes = [2, 128], strides = [1, 1]} : vector<16x128xf32> to vector<2x128xf32>
    %48 = arith.select %25, %46, %47 : vector<2x128xi1>, vector<2x128xf32>
    %49 = vector.broadcast %4 : vector<1x128xf32> to vector<2x128xf32>
    %50 = arith.addf %48, %49 : vector<2x128xf32>
    %51 = vector.extract_strided_slice %2 {offsets = [8, 0], sizes = [2, 128], strides = [1, 1]} : vector<16x128xf32> to vector<2x128xf32>
    %52 = vector.extract_strided_slice %2 {offsets = [6, 0], sizes = [2, 128], strides = [1, 1]} : vector<16x128xf32> to vector<2x128xf32>
    %53 = arith.select %25, %51, %52 : vector<2x128xi1>, vector<2x128xf32>
    %54 = vector.broadcast %4 : vector<1x128xf32> to vector<2x128xf32>
    %55 = arith.addf %53, %54 : vector<2x128xf32>
    %56 = vector.extract_strided_slice %2 {offsets = [10, 0], sizes = [2, 128], strides = [1, 1]} : vector<16x128xf32> to vector<2x128xf32>
    %57 = vector.extract_strided_slice %2 {offsets = [4, 0], sizes = [2, 128], strides = [1, 1]} : vector<16x128xf32> to vector<2x128xf32>
    %58 = arith.select %25, %56, %57 : vector<2x128xi1>, vector<2x128xf32>
    %59 = vector.broadcast %4 : vector<1x128xf32> to vector<2x128xf32>
    %60 = arith.addf %58, %59 : vector<2x128xf32>
    %61 = vector.extract_strided_slice %2 {offsets = [12, 0], sizes = [2, 128], strides = [1, 1]} : vector<16x128xf32> to vector<2x128xf32>
    %62 = vector.extract_strided_slice %2 {offsets = [2, 0], sizes = [2, 128], strides = [1, 1]} : vector<16x128xf32> to vector<2x128xf32>
    %63 = arith.select %25, %61, %62 : vector<2x128xi1>, vector<2x128xf32>
    %64 = vector.broadcast %4 : vector<1x128xf32> to vector<2x128xf32>
    %65 = arith.addf %63, %64 : vector<2x128xf32>
    %66 = vector.extract_strided_slice %2 {offsets = [14, 0], sizes = [2, 128], strides = [1, 1]} : vector<16x128xf32> to vector<2x128xf32>
    %67 = vector.extract_strided_slice %2 {offsets = [0, 0], sizes = [2, 128], strides = [1, 1]} : vector<16x128xf32> to vector<2x128xf32>
    %68 = arith.select %25, %66, %67 : vector<2x128xi1>, vector<2x128xf32>
    %69 = vector.broadcast %4 : vector<1x128xf32> to vector<2x128xf32>
    %70 = arith.addf %68, %69 : vector<2x128xf32>
    %cst_9 = arith.constant 0.000000e+00 : f32
    %71 = vector.broadcast %cst_9 : f32 to vector<2x32xf32>
    %cst_10 = arith.constant 0.000000e+00 : f32
    %72 = vector.broadcast %cst_10 : f32 to vector<2x32xf32>
    %cst_11 = arith.constant dense<0.000000e+00> : vector<2x128xf32>
    %73 = tpu.matmul %71, %3, %cst_11 {dimension_numbers = #tpu.dot_dimension_numbers<[1], [0], [0], [1], [0, 0, 1, 1], [], []>} : vector<2x32xf32>, vector<32x128xf32>, vector<2x128xf32> -> vector<2x128xf32>
    %74 = arith.addf %35, %73 : vector<2x128xf32>
    %75 = arith.negf %74 : vector<2x128xf32>
    %76 = math.exp %75 : vector<2x128xf32>
    %cst_12 = arith.constant 1.000000e+00 : f32
    %77 = vector.broadcast %cst_12 : f32 to vector<2x128xf32>
    %78 = arith.addf %77, %76 : vector<2x128xf32>
    %79 = arith.divf %77, %78 : vector<2x128xf32>
    %80 = math.tanh %74 : vector<2x128xf32>
    %81 = arith.select %30, %80, %79 : vector<2x128xi1>, vector<2x128xf32>
    %82 = vector.extract_strided_slice %81 {offsets = [0, 0], sizes = [2, 32], strides = [1, 1]} : vector<2x128xf32> to vector<2x32xf32>
    %83 = vector.extract_strided_slice %81 {offsets = [0, 32], sizes = [2, 32], strides = [1, 1]} : vector<2x128xf32> to vector<2x32xf32>
    %84 = vector.extract_strided_slice %81 {offsets = [0, 64], sizes = [2, 32], strides = [1, 1]} : vector<2x128xf32> to vector<2x32xf32>
    %85 = vector.extract_strided_slice %81 {offsets = [0, 96], sizes = [2, 32], strides = [1, 1]} : vector<2x128xf32> to vector<2x32xf32>
    %86 = arith.mulf %83, %72 : vector<2x32xf32>
    %87 = arith.mulf %82, %84 : vector<2x32xf32>
    %88 = arith.addf %86, %87 : vector<2x32xf32>
    %89 = math.tanh %88 : vector<2x32xf32>
    %90 = arith.mulf %85, %89 : vector<2x32xf32>
    %cst_13 = arith.constant dense<0.000000e+00> : vector<2x128xf32>
    %91 = tpu.matmul %90, %3, %cst_13 {dimension_numbers = #tpu.dot_dimension_numbers<[1], [0], [0], [1], [0, 0, 1, 1], [], []>} : vector<2x32xf32>, vector<32x128xf32>, vector<2x128xf32> -> vector<2x128xf32>
    %92 = arith.addf %40, %91 : vector<2x128xf32>
    %93 = arith.negf %92 : vector<2x128xf32>
    %94 = math.exp %93 : vector<2x128xf32>
    %cst_14 = arith.constant 1.000000e+00 : f32
    %95 = vector.broadcast %cst_14 : f32 to vector<2x128xf32>
    %96 = arith.addf %95, %94 : vector<2x128xf32>
    %97 = arith.divf %95, %96 : vector<2x128xf32>
    %98 = math.tanh %92 : vector<2x128xf32>
    %99 = arith.select %30, %98, %97 : vector<2x128xi1>, vector<2x128xf32>
    %100 = vector.extract_strided_slice %99 {offsets = [0, 0], sizes = [2, 32], strides = [1, 1]} : vector<2x128xf32> to vector<2x32xf32>
    %101 = vector.extract_strided_slice %99 {offsets = [0, 32], sizes = [2, 32], strides = [1, 1]} : vector<2x128xf32> to vector<2x32xf32>
    %102 = vector.extract_strided_slice %99 {offsets = [0, 64], sizes = [2, 32], strides = [1, 1]} : vector<2x128xf32> to vector<2x32xf32>
    %103 = vector.extract_strided_slice %99 {offsets = [0, 96], sizes = [2, 32], strides = [1, 1]} : vector<2x128xf32> to vector<2x32xf32>
    %104 = arith.mulf %101, %88 : vector<2x32xf32>
    %105 = arith.mulf %100, %102 : vector<2x32xf32>
    %106 = arith.addf %104, %105 : vector<2x32xf32>
    %107 = math.tanh %106 : vector<2x32xf32>
    %108 = arith.mulf %103, %107 : vector<2x32xf32>
    %cst_15 = arith.constant dense<0.000000e+00> : vector<2x128xf32>
    %109 = tpu.matmul %108, %3, %cst_15 {dimension_numbers = #tpu.dot_dimension_numbers<[1], [0], [0], [1], [0, 0, 1, 1], [], []>} : vector<2x32xf32>, vector<32x128xf32>, vector<2x128xf32> -> vector<2x128xf32>
    %110 = arith.addf %45, %109 : vector<2x128xf32>
    %111 = arith.negf %110 : vector<2x128xf32>
    %112 = math.exp %111 : vector<2x128xf32>
    %cst_16 = arith.constant 1.000000e+00 : f32
    %113 = vector.broadcast %cst_16 : f32 to vector<2x128xf32>
    %114 = arith.addf %113, %112 : vector<2x128xf32>
    %115 = arith.divf %113, %114 : vector<2x128xf32>
    %116 = math.tanh %110 : vector<2x128xf32>
    %117 = arith.select %30, %116, %115 : vector<2x128xi1>, vector<2x128xf32>
    %118 = vector.extract_strided_slice %117 {offsets = [0, 0], sizes = [2, 32], strides = [1, 1]} : vector<2x128xf32> to vector<2x32xf32>
    %119 = vector.extract_strided_slice %117 {offsets = [0, 32], sizes = [2, 32], strides = [1, 1]} : vector<2x128xf32> to vector<2x32xf32>
    %120 = vector.extract_strided_slice %117 {offsets = [0, 64], sizes = [2, 32], strides = [1, 1]} : vector<2x128xf32> to vector<2x32xf32>
    %121 = vector.extract_strided_slice %117 {offsets = [0, 96], sizes = [2, 32], strides = [1, 1]} : vector<2x128xf32> to vector<2x32xf32>
    %122 = arith.mulf %119, %106 : vector<2x32xf32>
    %123 = arith.mulf %118, %120 : vector<2x32xf32>
    %124 = arith.addf %122, %123 : vector<2x32xf32>
    %125 = math.tanh %124 : vector<2x32xf32>
    %126 = arith.mulf %121, %125 : vector<2x32xf32>
    %cst_17 = arith.constant dense<0.000000e+00> : vector<2x128xf32>
    %127 = tpu.matmul %126, %3, %cst_17 {dimension_numbers = #tpu.dot_dimension_numbers<[1], [0], [0], [1], [0, 0, 1, 1], [], []>} : vector<2x32xf32>, vector<32x128xf32>, vector<2x128xf32> -> vector<2x128xf32>
    %128 = arith.addf %50, %127 : vector<2x128xf32>
    %129 = arith.negf %128 : vector<2x128xf32>
    %130 = math.exp %129 : vector<2x128xf32>
    %cst_18 = arith.constant 1.000000e+00 : f32
    %131 = vector.broadcast %cst_18 : f32 to vector<2x128xf32>
    %132 = arith.addf %131, %130 : vector<2x128xf32>
    %133 = arith.divf %131, %132 : vector<2x128xf32>
    %134 = math.tanh %128 : vector<2x128xf32>
    %135 = arith.select %30, %134, %133 : vector<2x128xi1>, vector<2x128xf32>
    %136 = vector.extract_strided_slice %135 {offsets = [0, 0], sizes = [2, 32], strides = [1, 1]} : vector<2x128xf32> to vector<2x32xf32>
    %137 = vector.extract_strided_slice %135 {offsets = [0, 32], sizes = [2, 32], strides = [1, 1]} : vector<2x128xf32> to vector<2x32xf32>
    %138 = vector.extract_strided_slice %135 {offsets = [0, 64], sizes = [2, 32], strides = [1, 1]} : vector<2x128xf32> to vector<2x32xf32>
    %139 = vector.extract_strided_slice %135 {offsets = [0, 96], sizes = [2, 32], strides = [1, 1]} : vector<2x128xf32> to vector<2x32xf32>
    %140 = arith.mulf %137, %124 : vector<2x32xf32>
    %141 = arith.mulf %136, %138 : vector<2x32xf32>
    %142 = arith.addf %140, %141 : vector<2x32xf32>
    %143 = math.tanh %142 : vector<2x32xf32>
    %144 = arith.mulf %139, %143 : vector<2x32xf32>
    %cst_19 = arith.constant dense<0.000000e+00> : vector<2x128xf32>
    %145 = tpu.matmul %144, %3, %cst_19 {dimension_numbers = #tpu.dot_dimension_numbers<[1], [0], [0], [1], [0, 0, 1, 1], [], []>} : vector<2x32xf32>, vector<32x128xf32>, vector<2x128xf32> -> vector<2x128xf32>
    %146 = arith.addf %55, %145 : vector<2x128xf32>
    %147 = arith.negf %146 : vector<2x128xf32>
    %148 = math.exp %147 : vector<2x128xf32>
    %cst_20 = arith.constant 1.000000e+00 : f32
    %149 = vector.broadcast %cst_20 : f32 to vector<2x128xf32>
    %150 = arith.addf %149, %148 : vector<2x128xf32>
    %151 = arith.divf %149, %150 : vector<2x128xf32>
    %152 = math.tanh %146 : vector<2x128xf32>
    %153 = arith.select %30, %152, %151 : vector<2x128xi1>, vector<2x128xf32>
    %154 = vector.extract_strided_slice %153 {offsets = [0, 0], sizes = [2, 32], strides = [1, 1]} : vector<2x128xf32> to vector<2x32xf32>
    %155 = vector.extract_strided_slice %153 {offsets = [0, 32], sizes = [2, 32], strides = [1, 1]} : vector<2x128xf32> to vector<2x32xf32>
    %156 = vector.extract_strided_slice %153 {offsets = [0, 64], sizes = [2, 32], strides = [1, 1]} : vector<2x128xf32> to vector<2x32xf32>
    %157 = vector.extract_strided_slice %153 {offsets = [0, 96], sizes = [2, 32], strides = [1, 1]} : vector<2x128xf32> to vector<2x32xf32>
    %158 = arith.mulf %155, %142 : vector<2x32xf32>
    %159 = arith.mulf %154, %156 : vector<2x32xf32>
    %160 = arith.addf %158, %159 : vector<2x32xf32>
    %161 = math.tanh %160 : vector<2x32xf32>
    %162 = arith.mulf %157, %161 : vector<2x32xf32>
    %cst_21 = arith.constant dense<0.000000e+00> : vector<2x128xf32>
    %163 = tpu.matmul %162, %3, %cst_21 {dimension_numbers = #tpu.dot_dimension_numbers<[1], [0], [0], [1], [0, 0, 1, 1], [], []>} : vector<2x32xf32>, vector<32x128xf32>, vector<2x128xf32> -> vector<2x128xf32>
    %164 = arith.addf %60, %163 : vector<2x128xf32>
    %165 = arith.negf %164 : vector<2x128xf32>
    %166 = math.exp %165 : vector<2x128xf32>
    %cst_22 = arith.constant 1.000000e+00 : f32
    %167 = vector.broadcast %cst_22 : f32 to vector<2x128xf32>
    %168 = arith.addf %167, %166 : vector<2x128xf32>
    %169 = arith.divf %167, %168 : vector<2x128xf32>
    %170 = math.tanh %164 : vector<2x128xf32>
    %171 = arith.select %30, %170, %169 : vector<2x128xi1>, vector<2x128xf32>
    %172 = vector.extract_strided_slice %171 {offsets = [0, 0], sizes = [2, 32], strides = [1, 1]} : vector<2x128xf32> to vector<2x32xf32>
    %173 = vector.extract_strided_slice %171 {offsets = [0, 32], sizes = [2, 32], strides = [1, 1]} : vector<2x128xf32> to vector<2x32xf32>
    %174 = vector.extract_strided_slice %171 {offsets = [0, 64], sizes = [2, 32], strides = [1, 1]} : vector<2x128xf32> to vector<2x32xf32>
    %175 = vector.extract_strided_slice %171 {offsets = [0, 96], sizes = [2, 32], strides = [1, 1]} : vector<2x128xf32> to vector<2x32xf32>
    %176 = arith.mulf %173, %160 : vector<2x32xf32>
    %177 = arith.mulf %172, %174 : vector<2x32xf32>
    %178 = arith.addf %176, %177 : vector<2x32xf32>
    %179 = math.tanh %178 : vector<2x32xf32>
    %180 = arith.mulf %175, %179 : vector<2x32xf32>
    %cst_23 = arith.constant dense<0.000000e+00> : vector<2x128xf32>
    %181 = tpu.matmul %180, %3, %cst_23 {dimension_numbers = #tpu.dot_dimension_numbers<[1], [0], [0], [1], [0, 0, 1, 1], [], []>} : vector<2x32xf32>, vector<32x128xf32>, vector<2x128xf32> -> vector<2x128xf32>
    %182 = arith.addf %65, %181 : vector<2x128xf32>
    %183 = arith.negf %182 : vector<2x128xf32>
    %184 = math.exp %183 : vector<2x128xf32>
    %cst_24 = arith.constant 1.000000e+00 : f32
    %185 = vector.broadcast %cst_24 : f32 to vector<2x128xf32>
    %186 = arith.addf %185, %184 : vector<2x128xf32>
    %187 = arith.divf %185, %186 : vector<2x128xf32>
    %188 = math.tanh %182 : vector<2x128xf32>
    %189 = arith.select %30, %188, %187 : vector<2x128xi1>, vector<2x128xf32>
    %190 = vector.extract_strided_slice %189 {offsets = [0, 0], sizes = [2, 32], strides = [1, 1]} : vector<2x128xf32> to vector<2x32xf32>
    %191 = vector.extract_strided_slice %189 {offsets = [0, 32], sizes = [2, 32], strides = [1, 1]} : vector<2x128xf32> to vector<2x32xf32>
    %192 = vector.extract_strided_slice %189 {offsets = [0, 64], sizes = [2, 32], strides = [1, 1]} : vector<2x128xf32> to vector<2x32xf32>
    %193 = vector.extract_strided_slice %189 {offsets = [0, 96], sizes = [2, 32], strides = [1, 1]} : vector<2x128xf32> to vector<2x32xf32>
    %194 = arith.mulf %191, %178 : vector<2x32xf32>
    %195 = arith.mulf %190, %192 : vector<2x32xf32>
    %196 = arith.addf %194, %195 : vector<2x32xf32>
    %197 = math.tanh %196 : vector<2x32xf32>
    %198 = arith.mulf %193, %197 : vector<2x32xf32>
    %cst_25 = arith.constant dense<0.000000e+00> : vector<2x128xf32>
    %199 = tpu.matmul %198, %3, %cst_25 {dimension_numbers = #tpu.dot_dimension_numbers<[1], [0], [0], [1], [0, 0, 1, 1], [], []>} : vector<2x32xf32>, vector<32x128xf32>, vector<2x128xf32> -> vector<2x128xf32>
    %200 = arith.addf %70, %199 : vector<2x128xf32>
    %201 = arith.negf %200 : vector<2x128xf32>
    %202 = math.exp %201 : vector<2x128xf32>
    %cst_26 = arith.constant 1.000000e+00 : f32
    %203 = vector.broadcast %cst_26 : f32 to vector<2x128xf32>
    %204 = arith.addf %203, %202 : vector<2x128xf32>
    %205 = arith.divf %203, %204 : vector<2x128xf32>
    %206 = math.tanh %200 : vector<2x128xf32>
    %207 = arith.select %30, %206, %205 : vector<2x128xi1>, vector<2x128xf32>
    %208 = vector.extract_strided_slice %207 {offsets = [0, 0], sizes = [2, 32], strides = [1, 1]} : vector<2x128xf32> to vector<2x32xf32>
    %209 = vector.extract_strided_slice %207 {offsets = [0, 32], sizes = [2, 32], strides = [1, 1]} : vector<2x128xf32> to vector<2x32xf32>
    %210 = vector.extract_strided_slice %207 {offsets = [0, 64], sizes = [2, 32], strides = [1, 1]} : vector<2x128xf32> to vector<2x32xf32>
    %211 = vector.extract_strided_slice %207 {offsets = [0, 96], sizes = [2, 32], strides = [1, 1]} : vector<2x128xf32> to vector<2x32xf32>
    %212 = arith.mulf %209, %196 : vector<2x32xf32>
    %213 = arith.mulf %208, %210 : vector<2x32xf32>
    %214 = arith.addf %212, %213 : vector<2x32xf32>
    %215 = math.tanh %214 : vector<2x32xf32>
    %216 = arith.mulf %211, %215 : vector<2x32xf32>
    %c0_27 = arith.constant 0 : index
    %c0_28 = arith.constant 0 : index
    %217 = vector.load %arg4[%c0_27, %c0_28] : memref<1x32xf32, #tpu.memory_space<vmem>>, vector<1x32xf32>
    %218 = vector.broadcast %217 : vector<1x32xf32> to vector<2x32xf32>
    %219 = arith.mulf %216, %218 : vector<2x32xf32>
    %cst_29 = arith.constant dense<0.000000e+00> : vector<2xf32>
    %220 = vector.multi_reduction <add>, %219, %cst_29 [1] : vector<2x32xf32> to vector<2xf32>
    %221 = vector.shape_cast %220 : vector<2xf32> to vector<2x1xf32>
    %c0_30 = arith.constant 0 : index
    %c0_31 = arith.constant 0 : index
    %222 = vector.load %arg5[%c0_30, %c0_31] : memref<1x1xf32, #tpu.memory_space<vmem>>, vector<1x1xf32>
    %223 = vector.broadcast %222 : vector<1x1xf32> to vector<2x1xf32>
    %224 = arith.addf %221, %223 : vector<2x1xf32>
    %225 = arith.negf %224 : vector<2x1xf32>
    %226 = math.exp %225 : vector<2x1xf32>
    %cst_32 = arith.constant 1.000000e+00 : f32
    %227 = vector.broadcast %cst_32 : f32 to vector<2x1xf32>
    %228 = arith.addf %227, %226 : vector<2x1xf32>
    %229 = arith.divf %227, %228 : vector<2x1xf32>
    %c0_33 = arith.constant 0 : index
    %c0_34 = arith.constant 0 : index
    %230 = vector.load %arg6[%c0_33, %c0_34] : memref<2x1xf32, #tpu.memory_space<vmem>>, vector<2x1xf32>
    tpu.vector_store %arg6[%c0_33, %c0_34], %229 {strides = array<i32>} : memref<2x1xf32, #tpu.memory_space<vmem>>, vector<2x1xf32>,
    return
  }
}

</mosaic_0001>

<bundles_post_ra>
// kernel: wrapper_title_branch_forward.1
= control target key start
LH: loop header
LB: loop body
LE: loop exit
PB: predicated region body
PF: predicated region fallthrough
CT: control target
= control target key end

     0   :  { %s995_s0 = inlined_call_operand.vmem [shape: f32[16,16], index: 0, kind: input, shape index: {}]   ;;  %s996_s1 = inlined_call_operand.hbm [shape: f32[16,128], index: 1, kind: input, shape index: {}]   ;;  %s997_s2 = inlined_call_operand.vmem [shape: f32[32,128], index: 2, kind: input, shape index: {}]   ;;  %s998_s3 = inlined_call_operand.vmem [shape: f32[1,128], index: 3, kind: input, shape index: {}]   ;;  %s999_s4 = inlined_call_operand.vmem [shape: f32[1,32], index: 4, kind: input, shape index: {}]   ;;  %s1000_s5 = inlined_call_operand.<no memory space> [shape: f32[1,1], index: 5, kind: input, shape index: {}]   ;;  %s1001_s6 = inlined_call_operand.vmem [shape: f32[2,1], index: 6, kind: output, shape index: {}]  }
   0x1   :  { %v11_v0 = vstv %s1000_s5 }
   0x2   :  { %12 = vst [vmem:[#allocation2] sm:$0x1] %v11_v0 }
   0x3   :  { %13 = vsyncpa [#allocation4], 0  ;;  %s20_s25 = sshll.u32 %s996_s1, 4  ;;  %s841_s26 = smov [#allocation3]   ;;  %s21_s25 = int_to_ptr.hbm [resolvable:$true] %s20_s25 }
   0x4   :  { %s22_s27 = sshll.u32 %s841_s26, 4  ;;  %s842_s28 = smov 128   ;;  %s23_s27 = int_to_ptr.vmem [resolvable:$true] %s22_s27 }
   0x5   :  { %s843_s29 = smov 8  }
   0x6   :  { %28 = dma.hbm_to_vmem [thread:$0]  %s21_s25, 256, %s23_s27, [#allocation4], %s842_s28, %s842_s28, %s843_s29  }
   0x7   :  { %839 = dma.done.wait [#allocation4], 256  }
   0x8   :  { %840 = vsyncadd [#allocation4], 4294967040  ;;  %v44_v1 = vld [vmem:[#allocation3 + $0x8] sm:$0xff]  ;;  %v43_v2 = vld [vmem:[#allocation3] sm:$0xff]  ;;  %vm45_vm0 = vcmask 130048   ;;  %v844_v9 = vmov 0.0   ;;  %v80_v10 = vlaneseq }
   0x9   :  { %66 = vmatpush.msra.mxu0 %v44_v1  ;;  %v41_v3 = vld [vmem:[%s995_s0] sm:$0xff]  ;;  %v78_v4 = vld [vmem:[%s997_s2 + $0x18] sm:$0xff]  ;;  %v77_v5 = vld [vmem:[%s997_s2 + $0x10] sm:$0xff]  ;;  %s846_s16 = smov 32   ;;  %s847_s19 = smov 96  }
   0xa   :  { %134 = vmatpush.msra.mxu1 %v78_v4  ;;  %198 = vmatpush.msra.mxu2 %v78_v4  ;;  %v76_v6 = vld [vmem:[%s997_s2 + $0x8] sm:$0xff]  ;;  %v75_v7 = vld [vmem:[%s997_s2] sm:$0xff]  ;;  %v81_v11 = vand.u32 127, %v80_v10 }
   0xb   :  { %67 = vmatpush.msra.mxu0 %v43_v2  ;;  %269 = vmatpush.msra.mxu3 %v78_v4  ;;  %v42_v8 = vld [vmem:[%s995_s0 + $0x8] sm:$0xff]  ;;  %v744_v13 = vld [vmem:[%s998_s3] ss:$0 sm:$0xff]  ;;  %s845_s3 = smov 64  }
   0xc   :  { %719 = vmatmul.msk.f32.vlgmr.msra.gmra.mxu0 %vm45_vm0, %v41_v3  ;;  %135 = vmatpush.msra.mxu1 %v77_v5  ;;  %vm83_vm1 = vcmp.ge.s32.totalorder %v81_v11, 32  ;;  %vm84_vm2 = vcmp.lt.s32.totalorder %v81_v11, 48  ;;  %vm82_vm3 = vcmp.lt.s32.totalorder %v81_v11, 16  ;;  %vm87_vm5 = vcmp.ge.s32.totalorder %v81_v11, 64 }
   0xd   :  { %199 = vmatpush.msra.mxu2 %v77_v5  ;;  %270 = vmatpush.msra.mxu3 %v77_v5  ;;  %vm85_vm4 = vmand %vm83_vm1, %vm84_vm2  ;;  %vm88_vm6 = vcmp.lt.s32.totalorder %v81_v11, 80  ;;  %vm91_vm9 = vcmp.ge.s32.totalorder %v81_v11, 96  ;;  %vm92_vm10 = vcmp.lt.s32.totalorder %v81_v11, 112  ;;  %vm95_vm14 = vcmp.lt.s32.totalorder %v81_v11, 96 }
   0xe   :  { %136 = vmatpush.msra.mxu1 %v76_v6  ;;  %549 = vmatpush.msrb.mxu0 %v78_v4  ;;  %vm86_vm7 = vmor %vm82_vm3, %vm85_vm4  ;;  %vm118_vm4 = vcmask 261120  }
   0xf   :  { %200 = vmatpush.msra.mxu2 %v76_v6  ;;  %271 = vmatpush.msra.mxu3 %v76_v6  ;;  %vm89_vm8 = vmand %vm87_vm5, %vm88_vm6 }
  0x10   :  { %137 = vmatpush.msra.mxu1 %v75_v7  ;;  %550 = vmatpush.msrb.mxu0 %v77_v5  ;;  %vm90_vm11 = vmor %vm86_vm7, %vm89_vm8 }
  0x11   :  { %138 = vmatmul.f32.vlgmr.msra.gmra.mxu1 %v844_v9  ;;  %201 = vmatpush.msra.mxu2 %v75_v7  ;;  %vm93_vm12 = vmand %vm91_vm9, %vm92_vm10 }
  0x12   :  { %272 = vmatpush.msra.mxu3 %v75_v7  ;;  %340 = vmatpush.msrb.mxu1 %v78_v4  ;;  %vm94_vm13 = vmor %vm90_vm11, %vm93_vm12 }
  0x13   :  { %411 = vmatpush.msrb.mxu2 %v78_v4  ;;  %551 = vmatpush.msrb.mxu0 %v76_v6 }
  0x14   :  { %478 = vmatpush.msrb.mxu3 %v78_v4  ;;  %720 = vmatmul.msk.f32.gmra.mxu0 %vm45_vm0, %v42_v8  ;;  %vm923_vm0 = vmand %vm87_vm5, %vm95_vm14 }
  0x15   :  { %341 = vmatpush.msrb.mxu1 %v77_v5  ;;  %412 = vmatpush.msrb.mxu2 %v77_v5 }
  0x16   :  { %479 = vmatpush.msrb.mxu3 %v77_v5  ;;  %552 = vmatpush.msrb.mxu0 %v75_v7 }
  0x17   :  { %342 = vmatpush.msrb.mxu1 %v76_v6  ;;  %413 = vmatpush.msrb.mxu2 %v76_v6 }
  0x18   :  { %480 = vmatpush.msrb.mxu3 %v76_v6 }
  0x19   :  { %343 = vmatpush.msrb.mxu1 %v75_v7  ;;  %414 = vmatpush.msrb.mxu2 %v75_v7 }
  0x1a   :  { %481 = vmatpush.msrb.mxu3 %v75_v7 }
  0x1b   :  { %620 = vmatpush.msra.mxu1 %v78_v4 }
  0x1d   :  { %621 = vmatpush.msra.mxu1 %v77_v5 }
  0x1f   :  { %622 = vmatpush.msra.mxu1 %v76_v6 }
  0x21   :  { %623 = vmatpush.msra.mxu1 %v75_v7 }
  0x89   :  { %v69_v12 = vpop.f32.mrf.mxu0 }
  0x8a   :  { %v110_v14 = vrot.slane %v69_v12, 6  ;;  %v114_v15 = vrot.slane %v69_v12, 2 }
  0x8e   :  { %v139_v24 = vpop.f32.mrf.mxu1 }
  0x91   :  { %v72_v16 = vpop.f32.mrf.mxu0 }
  0x92   :  { %v98_v17 = vrot.slane %v72_v16, 6  ;;  %v105_v18 = vrot.slane %v72_v16, 2  ;;  %v112_v19 = vsel %vm94_vm13, %v72_v16, %v110_v14  ;;  %v116_v20 = vsel %vm94_vm13, %v72_v16, %v114_v15 }
  0x93   :  { %v913_v21 = vadd.f32 %v744_v13, %v112_v19  ;;  %v915_v22 = vadd.f32 %v744_v13, %v116_v20 }
  0x94   :  { %v100_v23 = vsel %vm94_vm13, %v69_v12, %v98_v17  ;;  %v107_v25 = vsel %vm94_vm13, %v69_v12, %v105_v18 }
  0x95   :  { %v917_v26 = vadd.f32 %v744_v13, %v100_v23  ;;  %v919_v27 = vadd.f32 %v744_v13, %v107_v25 }
  0x97   :  { %v142_v28 = vadd.f32 %v139_v24, %v917_v26 }
  0x99   :  { %v721_v29 = vmul.f32 -1.442695, %v142_v28 }
  0x9b   :  { %747 = vpow2.f32 %v721_v29 }
  0xa1   :  { %v748_v30 = vpop.eup %747 }
  0xa2   :  { %v146_v31 = vadd.f32 1.0, %v748_v30 }
  0xa4   :  { %749 = vrcp.f32 %v146_v31  ;;  %v158_v35 = vand.u32 2147483648, %v146_v31  ;;  %v156_v37 = vand.u32 2147483647, %v146_v31  ;;  %vm152_vm1 = vweird.f32 %v146_v31 }
  0xa5   :  { %751 = vtanh.f32 %v142_v28 }
  0xa6   :  { %v159_v40 = vor.u32 1.1754944e-38, %v158_v35  ;;  %vm157_vm3 = vcmp.eq.f32.partialorder %v156_v37, 8.507059e+37 }
  0xaa   :  { %v750_v32 = vpop.eup %749 }
  0xab   :  { %v148_v33 = vmul.f32 %v750_v32, %v146_v31  ;;  %vm153_vm15 = vweird.f32 %v750_v32  ;;  %v752_v42 = vpop.eup %751 }
  0xac   :  { %vm154_vm2 = vmor %vm152_vm1, %vm153_vm15 }
  0xad   :  { %v149_v34 = vsub.f32 1.0, %v148_v33 }
  0xaf   :  { %v150_v36 = vmul.f32 %v750_v32, %v149_v34 }
  0xb1   :  { %v151_v39 = vadd.f32 %v750_v32, %v150_v36 }
  0xb3   :  { %v155_v41 = vsel %vm154_vm2, %v750_v32, %v151_v39 }
  0xb4   :  { %v160_v43 = vsel %vm157_vm3, %v159_v40, %v155_v41 }
  0xb5   :  { %v163_v44 = vsel %vm923_vm0, %v752_v42, %v160_v43 }
  0xb6   :  { %166 = vrot.lane.b32.xlu0 %v163_v44, %s845_s3  ;;  %v164_v47 = vmul.f32 0.0, %v163_v44 }
 0x128   :  { %v167_v45 = vpop.permute.xlu0 %166 }
 0x129   :  { %v169_v46 = vmul.f32 %v167_v45, %v163_v44 }
 0x12b   :  { %171 = vrot.lane.b32.xlu0 %v169_v46, %s846_s16 }
 0x19d   :  { %v172_v48 = vpop.permute.xlu0 %171 }
 0x19e   :  { %v174_v49 = vadd.f32 %v172_v48, %v164_v47 }
 0x1a0   :  { %753 = vtanh.f32 %v174_v49  ;;  %v232_v10 = vrot.slane %v174_v49, 6 }
 0x1a6   :  { %v754_v50 = vpop.eup %753 }
 0x1a7   :  { %177 = vrot.lane.b32.xlu1 %v754_v50, %s845_s3 }
 0x219   :  { %v178_v51 = vpop.permute.xlu1 %177 }
 0x21a   :  { %v180_v52 = vmul.f32 %v178_v51, %v163_v44 }
 0x21c   :  { %182 = vrot.lane.b32.xlu1 %v180_v52, %s846_s16 }
 0x28e   :  { %v183_v53 = vpop.permute.xlu1 %182 }
 0x28f   :  { %722 = vmatmul.msk.f32.vlgmr.msra.gmra.mxu2 %vm118_vm4, %v183_v53 }
 0x312   :  { %v203_v54 = vpop.f32.mrf.mxu2 }
 0x313   :  { %v207_v55 = vrot.slane %v203_v54, 6 }
 0x315   :  { %v209_v56 = vadd.f32 %v207_v55, %v919_v27 }
 0x317   :  { %v723_v57 = vmul.f32 -1.442695, %v209_v56 }
 0x319   :  { %755 = vpow2.f32 %v723_v57 }
 0x31f   :  { %v756_v58 = vpop.eup %755 }
 0x320   :  { %v213_v59 = vadd.f32 1.0, %v756_v58 }
 0x322   :  { %757 = vrcp.f32 %v213_v59  ;;  %v225_v63 = vand.u32 2147483648, %v213_v59  ;;  %v223_v1 = vand.u32 2147483647, %v213_v59  ;;  %vm219_vm6 = vweird.f32 %v213_v59 }
 0x323   :  { %759 = vtanh.f32 %v209_v56 }
 0x324   :  { %v226_v3 = vor.u32 1.1754944e-38, %v225_v63  ;;  %vm224_vm8 = vcmp.eq.f32.partialorder %v223_v1, 8.507059e+37 }
 0x328   :  { %v758_v60 = vpop.eup %757 }
 0x329   :  { %v215_v61 = vmul.f32 %v758_v60, %v213_v59  ;;  %vm220_vm5 = vweird.f32 %v758_v60  ;;  %v760_v5 = vpop.eup %759 }
 0x32a   :  { %vm221_vm7 = vmor %vm219_vm6, %vm220_vm5 }
 0x32b   :  { %v216_v62 = vsub.f32 1.0, %v215_v61 }
 0x32d   :  { %v217_v0 = vmul.f32 %v758_v60, %v216_v62 }
 0x32f   :  { %v218_v2 = vadd.f32 %v758_v60, %v217_v0 }
 0x331   :  { %v222_v4 = vsel %vm221_vm7, %v758_v60, %v218_v2 }
 0x332   :  { %v227_v6 = vsel %vm224_vm8, %v226_v3, %v222_v4 }
 0x333   :  { %v230_v7 = vsel %vm923_vm0, %v760_v5, %v227_v6 }
 0x334   :  { %236 = vrot.lane.b32.xlu2 %v230_v7, %s845_s3  ;;  %v234_v11 = vmul.f32 %v232_v10, %v230_v7 }
 0x38e   :  { %v237_v8 = vpop.permute.xlu2 %236 }
 0x38f   :  { %v239_v9 = vmul.f32 %v237_v8, %v230_v7 }
 0x391   :  { %241 = vrot.lane.b32.xlu2 %v239_v9, %s846_s16 }
 0x3eb   :  { %v242_v12 = vpop.permute.xlu2 %241 }
 0x3ec   :  { %v244_v13 = vadd.f32 %v242_v12, %v234_v11 }
 0x3ee   :  { %761 = vtanh.f32 %v244_v13  ;;  %v303_v43 = vrot.slane %v244_v13, 6 }
 0x3f4   :  { %v762_v14 = vpop.eup %761 }
 0x3f5   :  { %247 = vrot.lane.b32.xlu0 %v762_v14, %s845_s3 }
 0x467   :  { %v248_v15 = vpop.permute.xlu0 %247 }
 0x468   :  { %v250_v16 = vmul.f32 %v248_v15, %v230_v7 }
 0x46a   :  { %v252_v17 = vrot.slane %v250_v16, 2 }
 0x46c   :  { %253 = vrot.lane.b32.xlu1 %v252_v17, %s846_s16 }
 0x4de   :  { %v254_v18 = vpop.permute.xlu1 %253 }
 0x4df   :  { %724 = vmatmul.msk.f32.vlgmr.msra.gmra.mxu3 %vm118_vm4, %v254_v18 }
 0x562   :  { %v274_v19 = vpop.f32.mrf.mxu3 }
 0x563   :  { %v278_v20 = vrot.slane %v274_v19, 4 }
 0x565   :  { %v280_v23 = vadd.f32 %v278_v20, %v917_v26 }
 0x567   :  { %v725_v24 = vmul.f32 -1.442695, %v280_v23 }
 0x569   :  { %763 = vpow2.f32 %v725_v24 }
 0x56f   :  { %v764_v25 = vpop.eup %763 }
 0x570   :  { %v284_v28 = vadd.f32 1.0, %v764_v25 }
 0x572   :  { %765 = vrcp.f32 %v284_v28  ;;  %v296_v32 = vand.u32 2147483648, %v284_v28  ;;  %v294_v34 = vand.u32 2147483647, %v284_v28  ;;  %vm290_vm10 = vweird.f32 %v284_v28 }
 0x573   :  { %767 = vtanh.f32 %v280_v23 }
 0x574   :  { %v297_v36 = vor.u32 1.1754944e-38, %v296_v32  ;;  %vm295_vm12 = vcmp.eq.f32.partialorder %v294_v34, 8.507059e+37 }
 0x578   :  { %v766_v29 = vpop.eup %765 }
 0x579   :  { %v286_v30 = vmul.f32 %v766_v29, %v284_v28  ;;  %vm291_vm9 = vweird.f32 %v766_v29  ;;  %v768_v26 = vpop.eup %767 }
 0x57a   :  { %vm292_vm11 = vmor %vm290_vm10, %vm291_vm9 }
 0x57b   :  { %v287_v31 = vsub.f32 1.0, %v286_v30 }
 0x57d   :  { %v288_v33 = vmul.f32 %v766_v29, %v287_v31 }
 0x57f   :  { %v289_v35 = vadd.f32 %v766_v29, %v288_v33 }
 0x581   :  { %v293_v37 = vsel %vm292_vm11, %v766_v29, %v289_v35 }
 0x582   :  { %v298_v39 = vsel %vm295_vm12, %v297_v36, %v293_v37 }
 0x583   :  { %v301_v40 = vsel %vm923_vm0, %v768_v26, %v298_v39 }
 0x584   :  { %307 = vrot.lane.b32.xlu2 %v301_v40, %s845_s3  ;;  %v305_v44 = vmul.f32 %v303_v43, %v301_v40 }
 0x5de   :  { %v308_v41 = vpop.permute.xlu2 %307 }
 0x5df   :  { %v310_v42 = vmul.f32 %v308_v41, %v301_v40 }
 0x5e1   :  { %312 = vrot.lane.b32.xlu0 %v310_v42, %s846_s16 }
 0x653   :  { %v313_v45 = vpop.permute.xlu0 %312 }
 0x654   :  { %v315_v46 = vadd.f32 %v313_v45, %v305_v44 }
 0x656   :  { %769 = vtanh.f32 %v315_v46  ;;  %v374_v7 = vrot.slane %v315_v46, 6 }
 0x65c   :  { %v770_v47 = vpop.eup %769 }
 0x65d   :  { %318 = vrot.lane.b32.xlu1 %v770_v47, %s845_s3 }
 0x6cf   :  { %v319_v48 = vpop.permute.xlu1 %318 }
 0x6d0   :  { %v321_v49 = vmul.f32 %v319_v48, %v301_v40 }
 0x6d2   :  { %v323_v50 = vrot.slane %v321_v49, 4 }
 0x6d4   :  { %324 = vrot.lane.b32.xlu2 %v323_v50, %s846_s16 }
 0x72e   :  { %v325_v51 = vpop.permute.xlu2 %324 }
 0x72f   :  { %726 = vmatmul.msk.f32.vlgmr.msrb.gmra.mxu1 %vm118_vm4, %v325_v51 }
 0x7ac   :  { %v345_v52 = vpop.f32.mrf.mxu1 }
 0x7ad   :  { %v349_v53 = vrot.slane %v345_v52, 2 }
 0x7af   :  { %v351_v54 = vadd.f32 %v349_v53, %v919_v27 }
 0x7b1   :  { %v727_v55 = vmul.f32 -1.442695, %v351_v54 }
 0x7b3   :  { %771 = vpow2.f32 %v727_v55 }
 0x7b9   :  { %v772_v56 = vpop.eup %771 }
 0x7ba   :  { %v355_v57 = vadd.f32 1.0, %v772_v56 }
 0x7bc   :  { %773 = vrcp.f32 %v355_v57  ;;  %v367_v61 = vand.u32 2147483648, %v355_v57  ;;  %v365_v63 = vand.u32 2147483647, %v355_v57  ;;  %vm361_vm14 = vweird.f32 %v355_v57 }
 0x7bd   :  { %775 = vtanh.f32 %v351_v54 }
 0x7be   :  { %v368_v1 = vor.u32 1.1754944e-38, %v367_v61  ;;  %vm366_vm1 = vcmp.eq.f32.partialorder %v365_v63, 8.507059e+37 }
 0x7c2   :  { %v774_v58 = vpop.eup %773 }
 0x7c3   :  { %v357_v59 = vmul.f32 %v774_v58, %v355_v57  ;;  %vm362_vm13 = vweird.f32 %v774_v58  ;;  %v776_v27 = vpop.eup %775 }
 0x7c4   :  { %vm363_vm15 = vmor %vm361_vm14, %vm362_vm13 }
 0x7c5   :  { %v358_v60 = vsub.f32 1.0, %v357_v59 }
 0x7c7   :  { %v359_v62 = vmul.f32 %v774_v58, %v358_v60 }
 0x7c9   :  { %v360_v0 = vadd.f32 %v774_v58, %v359_v62 }
 0x7cb   :  { %v364_v2 = vsel %vm363_vm15, %v774_v58, %v360_v0 }
 0x7cc   :  { %v369_v3 = vsel %vm366_vm1, %v368_v1, %v364_v2 }
 0x7cd   :  { %v372_v4 = vsel %vm923_vm0, %v776_v27, %v369_v3 }
 0x7ce   :  { %378 = vrot.lane.b32.xlu0 %v372_v4, %s845_s3  ;;  %v376_v8 = vmul.f32 %v374_v7, %v372_v4 }
 0x840   :  { %v379_v5 = vpop.permute.xlu0 %378 }
 0x841   :  { %v381_v6 = vmul.f32 %v379_v5, %v372_v4 }
 0x843   :  { %383 = vrot.lane.b32.xlu1 %v381_v6, %s846_s16 }
 0x8b5   :  { %v384_v9 = vpop.permute.xlu1 %383 }
 0x8b6   :  { %v386_v10 = vadd.f32 %v384_v9, %v376_v8 }
 0x8b8   :  { %777 = vtanh.f32 %v386_v10  ;;  %v442_v39 = vrot.slane %v386_v10, 6 }
 0x8be   :  { %v778_v11 = vpop.eup %777 }
 0x8bf   :  { %389 = vrot.lane.b32.xlu2 %v778_v11, %s845_s3 }
 0x919   :  { %v390_v12 = vpop.permute.xlu2 %389 }
 0x91a   :  { %v392_v13 = vmul.f32 %v390_v12, %v372_v4 }
 0x91c   :  { %v394_v14 = vrot.slane %v392_v13, 6 }
 0x91e   :  { %395 = vrot.lane.b32.xlu0 %v394_v14, %s846_s16 }
 0x990   :  { %v396_v15 = vpop.permute.xlu0 %395 }
 0x991   :  { %728 = vmatmul.msk.f32.vlgmr.msrb.gmra.mxu2 %vm118_vm4, %v396_v15 }
 0xa14   :  { %v416_v16 = vpop.f32.mrf.mxu2 }
 0xa15   :  { %v419_v17 = vadd.f32 %v416_v16, %v913_v21 }
 0xa17   :  { %v729_v18 = vmul.f32 -1.442695, %v419_v17 }
 0xa19   :  { %779 = vpow2.f32 %v729_v18 }
 0xa1f   :  { %v780_v19 = vpop.eup %779 }
 0xa20   :  { %v423_v20 = vadd.f32 1.0, %v780_v19 }
 0xa22   :  { %781 = vrcp.f32 %v423_v20  ;;  %v435_v28 = vand.u32 2147483648, %v423_v20  ;;  %v433_v30 = vand.u32 2147483647, %v423_v20  ;;  %vm429_vm3 = vweird.f32 %v423_v20 }
 0xa23   :  { %783 = vtanh.f32 %v419_v17 }
 0xa24   :  { %v436_v32 = vor.u32 1.1754944e-38, %v435_v28  ;;  %vm434_vm6 = vcmp.eq.f32.partialorder %v433_v30, 8.507059e+37 }
 0xa28   :  { %v782_v23 = vpop.eup %781 }
 0xa29   :  { %v425_v24 = vmul.f32 %v782_v23, %v423_v20  ;;  %vm430_vm2 = vweird.f32 %v782_v23  ;;  %v784_v34 = vpop.eup %783 }
 0xa2a   :  { %vm431_vm5 = vmor %vm429_vm3, %vm430_vm2 }
 0xa2b   :  { %v426_v25 = vsub.f32 1.0, %v425_v24 }
 0xa2d   :  { %v427_v29 = vmul.f32 %v782_v23, %v426_v25 }
 0xa2f   :  { %v428_v31 = vadd.f32 %v782_v23, %v427_v29 }
 0xa31   :  { %v432_v33 = vsel %vm431_vm5, %v782_v23, %v428_v31 }
 0xa32   :  { %v437_v35 = vsel %vm434_vm6, %v436_v32, %v432_v33  ;;  %vm712_vm6 = vcmask 7174  }
 0xa33   :  { %v440_v36 = vsel %vm923_vm0, %v784_v34, %v437_v35 }
 0xa34   :  { %446 = vrot.lane.b32.xlu1 %v440_v36, %s845_s3  ;;  %v444_v40 = vmul.f32 %v442_v39, %v440_v36 }
 0xaa6   :  { %v447_v37 = vpop.permute.xlu1 %446 }
 0xaa7   :  { %v449_v26 = vmul.f32 %v447_v37, %v440_v36 }
 0xaa9   :  { %451 = vrot.lane.b32.xlu2 %v449_v26, %s846_s16 }
 0xb03   :  { %v452_v41 = vpop.permute.xlu2 %451 }
 0xb04   :  { %v454_v42 = vadd.f32 %v452_v41, %v444_v40 }
 0xb06   :  { %785 = vtanh.f32 %v454_v42  ;;  %v512_v27 = vrot.slane %v454_v42, 6 }
 0xb0c   :  { %v786_v43 = vpop.eup %785 }
 0xb0d   :  { %457 = vrot.lane.b32.xlu0 %v786_v43, %s845_s3 }
 0xb7f   :  { %v458_v44 = vpop.permute.xlu0 %457 }
 0xb80   :  { %v460_v45 = vmul.f32 %v458_v44, %v440_v36 }
 0xb82   :  { %462 = vrot.lane.b32.xlu1 %v460_v45, %s846_s16 }
 0xbf4   :  { %v463_v46 = vpop.permute.xlu1 %462 }
 0xbf5   :  { %730 = vmatmul.msk.f32.vlgmr.msrb.gmra.mxu3 %vm118_vm4, %v463_v46 }
 0xc78   :  { %v483_v47 = vpop.f32.mrf.mxu3 }
 0xc79   :  { %v487_v48 = vrot.slane %v483_v47, 6 }
 0xc7b   :  { %v489_v49 = vadd.f32 %v487_v48, %v915_v22 }
 0xc7d   :  { %v731_v50 = vmul.f32 -1.442695, %v489_v49 }
 0xc7f   :  { %787 = vpow2.f32 %v731_v50 }
 0xc85   :  { %v788_v51 = vpop.eup %787 }
 0xc86   :  { %v493_v52 = vadd.f32 1.0, %v788_v51 }
 0xc88   :  { %789 = vrcp.f32 %v493_v52  ;;  %v505_v56 = vand.u32 2147483648, %v493_v52  ;;  %v503_v58 = vand.u32 2147483647, %v493_v52  ;;  %vm499_vm8 = vweird.f32 %v493_v52 }
 0xc89   :  { %791 = vtanh.f32 %v489_v49 }
 0xc8a   :  { %v506_v60 = vor.u32 1.1754944e-38, %v505_v56  ;;  %vm504_vm10 = vcmp.eq.f32.partialorder %v503_v58, 8.507059e+37 }
 0xc8e   :  { %v790_v53 = vpop.eup %789 }
 0xc8f   :  { %v495_v54 = vmul.f32 %v790_v53, %v493_v52  ;;  %vm500_vm7 = vweird.f32 %v790_v53  ;;  %v792_v62 = vpop.eup %791 }
 0xc90   :  { %vm501_vm9 = vmor %vm499_vm8, %vm500_vm7 }
 0xc91   :  { %v496_v55 = vsub.f32 1.0, %v495_v54 }
 0xc93   :  { %v497_v57 = vmul.f32 %v790_v53, %v496_v55 }
 0xc95   :  { %v498_v59 = vadd.f32 %v790_v53, %v497_v57 }
 0xc97   :  { %v502_v61 = vsel %vm501_vm9, %v790_v53, %v498_v59 }
 0xc98   :  { %v507_v63 = vsel %vm504_vm10, %v506_v60, %v502_v61 }
 0xc99   :  { %v510_v0 = vsel %vm923_vm0, %v792_v62, %v507_v63  ;;  %v745_v62 = vld [vmem:[%s999_s4] ss:$0 sm:$0xff] }
 0xc9a   :  { %516 = vrot.lane.b32.xlu2 %v510_v0, %s845_s3  ;;  %v514_v3 = vmul.f32 %v512_v27, %v510_v0 }
 0xcf4   :  { %v517_v1 = vpop.permute.xlu2 %516 }
 0xcf5   :  { %v519_v2 = vmul.f32 %v517_v1, %v510_v0 }
 0xcf7   :  { %521 = vrot.lane.b32.xlu0 %v519_v2, %s846_s16 }
 0xd69   :  { %v522_v4 = vpop.permute.xlu0 %521 }
 0xd6a   :  { %v524_v5 = vadd.f32 %v522_v4, %v514_v3 }
 0xd6c   :  { %793 = vtanh.f32 %v524_v5  ;;  %v583_v34 = vrot.slane %v524_v5, 6 }
 0xd72   :  { %v794_v6 = vpop.eup %793 }
 0xd73   :  { %527 = vrot.lane.b32.xlu1 %v794_v6, %s845_s3 }
 0xde5   :  { %v528_v7 = vpop.permute.xlu1 %527 }
 0xde6   :  { %v530_v8 = vmul.f32 %v528_v7, %v510_v0 }
 0xde8   :  { %v532_v9 = vrot.slane %v530_v8, 2  ;;  %v746_v8 = vld [vmem:[#allocation2] ss:$0 sm:$0xff] }
 0xdea   :  { %533 = vrot.lane.b32.xlu2 %v532_v9, %s846_s16 }
 0xe44   :  { %v534_v10 = vpop.permute.xlu2 %533 }
 0xe45   :  { %732 = vmatmul.msk.f32.vlgmr.msrb.gmra.mxu0 %vm118_vm4, %v534_v10 }
 0xec2   :  { %v554_v11 = vpop.f32.mrf.mxu0 }
 0xec3   :  { %v558_v12 = vrot.slane %v554_v11, 4 }
 0xec5   :  { %v560_v13 = vadd.f32 %v558_v12, %v913_v21 }
 0xec7   :  { %v733_v14 = vmul.f32 -1.442695, %v560_v13 }
 0xec9   :  { %795 = vpow2.f32 %v733_v14 }
 0xecf   :  { %v796_v15 = vpop.eup %795 }
 0xed0   :  { %v564_v16 = vadd.f32 1.0, %v796_v15 }
 0xed2   :  { %797 = vrcp.f32 %v564_v16  ;;  %v576_v20 = vand.u32 2147483648, %v564_v16  ;;  %v574_v24 = vand.u32 2147483647, %v564_v16  ;;  %vm570_vm12 = vweird.f32 %v564_v16 }
 0xed3   :  { %799 = vtanh.f32 %v560_v13 }
 0xed4   :  { %v577_v28 = vor.u32 1.1754944e-38, %v576_v20  ;;  %vm575_vm14 = vcmp.eq.f32.partialorder %v574_v24, 8.507059e+37 }
 0xed8   :  { %v798_v17 = vpop.eup %797 }
 0xed9   :  { %v566_v18 = vmul.f32 %v798_v17, %v564_v16  ;;  %vm571_vm11 = vweird.f32 %v798_v17  ;;  %v800_v21 = vpop.eup %799 }
 0xeda   :  { %vm572_vm13 = vmor %vm570_vm12, %vm571_vm11 }
 0xedb   :  { %v567_v19 = vsub.f32 1.0, %v566_v18 }
 0xedd   :  { %v568_v23 = vmul.f32 %v798_v17, %v567_v19 }
 0xedf   :  { %v569_v25 = vadd.f32 %v798_v17, %v568_v23 }
 0xee1   :  { %v573_v29 = vsel %vm572_vm13, %v798_v17, %v569_v25 }
 0xee2   :  { %v578_v30 = vsel %vm575_vm14, %v577_v28, %v573_v29 }
 0xee3   :  { %v581_v31 = vsel %vm923_vm0, %v800_v21, %v578_v30 }
 0xee4   :  { %587 = vrot.lane.b32.xlu0 %v581_v31, %s845_s3  ;;  %v585_v35 = vmul.f32 %v583_v34, %v581_v31 }
 0xf56   :  { %v588_v32 = vpop.permute.xlu0 %587 }
 0xf57   :  { %v590_v33 = vmul.f32 %v588_v32, %v581_v31 }
 0xf59   :  { %592 = vrot.lane.b32.xlu1 %v590_v33, %s846_s16 }
 0xfcb   :  { %v593_v36 = vpop.permute.xlu1 %592 }
 0xfcc   :  { %v595_v37 = vadd.f32 %v593_v36, %v585_v35 }
 0xfce   :  { %801 = vtanh.f32 %v595_v37  ;;  %v654_v63 = vrot.slane %v595_v37, 6 }
 0xfd4   :  { %v802_v26 = vpop.eup %801 }
 0xfd5   :  { %598 = vrot.lane.b32.xlu2 %v802_v26, %s845_s3 }
0x102f   :  { %v599_v39 = vpop.permute.xlu2 %598 }
0x1030   :  { %v601_v40 = vmul.f32 %v599_v39, %v581_v31 }
0x1032   :  { %v603_v41 = vrot.slane %v601_v40, 4 }
0x1034   :  { %604 = vrot.lane.b32.xlu0 %v603_v41, %s846_s16 }
0x10a6   :  { %v605_v42 = vpop.permute.xlu0 %604 }
0x10a7   :  { %734 = vmatmul.msk.f32.vlgmr.msra.gmra.mxu1 %vm118_vm4, %v605_v42 }
0x1124   :  { %v625_v43 = vpop.f32.mrf.mxu1 }
0x1125   :  { %v629_v44 = vrot.slane %v625_v43, 2 }
0x1127   :  { %v631_v45 = vadd.f32 %v629_v44, %v915_v22 }
0x1129   :  { %v735_v46 = vmul.f32 -1.442695, %v631_v45 }
0x112b   :  { %803 = vpow2.f32 %v735_v46 }
0x1131   :  { %v804_v47 = vpop.eup %803 }
0x1132   :  { %v635_v48 = vadd.f32 1.0, %v804_v47 }
0x1134   :  { %805 = vrcp.f32 %v635_v48  ;;  %v647_v52 = vand.u32 2147483648, %v635_v48  ;;  %v645_v54 = vand.u32 2147483647, %v635_v48  ;;  %vm641_vm1 = vweird.f32 %v635_v48 }
0x1135   :  { %807 = vtanh.f32 %v631_v45 }
0x1136   :  { %v648_v56 = vor.u32 1.1754944e-38, %v647_v52  ;;  %vm646_vm2 = vcmp.eq.f32.partialorder %v645_v54, 8.507059e+37 }
0x113a   :  { %v806_v49 = vpop.eup %805 }
0x113b   :  { %v637_v50 = vmul.f32 %v806_v49, %v635_v48  ;;  %vm642_vm15 = vweird.f32 %v806_v49  ;;  %v808_v22 = vpop.eup %807 }
0x113c   :  { %vm643_vm4 = vmor %vm641_vm1, %vm642_vm15 }
0x113d   :  { %v638_v51 = vsub.f32 1.0, %v637_v50 }
0x113f   :  { %v639_v53 = vmul.f32 %v806_v49, %v638_v51 }
0x1141   :  { %v640_v55 = vadd.f32 %v806_v49, %v639_v53 }
0x1143   :  { %v644_v57 = vsel %vm643_vm4, %v806_v49, %v640_v55 }
0x1144   :  { %v649_v58 = vsel %vm646_vm2, %v648_v56, %v644_v57 }
0x1145   :  { %v652_v59 = vsel %vm923_vm0, %v808_v22, %v649_v58  ;;  %vm684_vm0 = vcmask 261126  }
0x1146   :  { %658 = vrot.lane.b32.xlu1 %v652_v59, %s845_s3  ;;  %v656_v0 = vmul.f32 %v654_v63, %v652_v59 }
0x114e   :  { %676 = vrot.lane.b32.xlu1 %v745_v62, %s847_s19 }
0x11b8   :  { %v659_v60 = vpop.permute.xlu1 %658 }
0x11b9   :  { %v661_v61 = vmul.f32 %v659_v60, %v652_v59 }
0x11bb   :  { %663 = vrot.lane.b32.xlu2 %v661_v61, %s846_s16 }
0x11c0   :  { %v677_v3 = vpop.permute.xlu1 %676 }
0x1215   :  { %v664_v1 = vpop.permute.xlu2 %663 }
0x1216   :  { %v666_v2 = vadd.f32 %v664_v1, %v656_v0 }
0x1218   :  { %809 = vtanh.f32 %v666_v2 }
0x121e   :  { %v810_v27 = vpop.eup %809 }
0x121f   :  { %669 = vrot.lane.b32.xlu0 %v810_v27, %s845_s3 }
0x1291   :  { %v670_v38 = vpop.permute.xlu0 %669 }
0x1292   :  { %v672_v4 = vmul.f32 %v670_v38, %v652_v59 }
0x1294   :  { %v679_v5 = vmul.f32 %v677_v3, %v672_v4 }
0x1296   :  { %681 = vrot.lane.b32.xlu2 %v679_v5, %s846_s16 }
0x12f0   :  { %v682_v6 = vpop.permute.xlu2 %681 }
0x12f1   :  { %v685_v7 = vsel %vm684_vm0, %v682_v6, 0.0 }
0x12f2   :  { %686 = vadd.xlane.f32.xlu0 %v685_v7 }
0x1365   :  { %v687_v9 = vpop.xlane.xlu0 %686 }
0x1366   :  { %v692_v10 = vadd.f32 %v746_v8, %v687_v9 }
0x1368   :  { %v736_v11 = vmul.f32 -1.442695, %v692_v10 }
0x136a   :  { %811 = vpow2.f32 %v736_v11 }
0x1370   :  { %v812_v12 = vpop.eup %811 }
0x1371   :  { %v696_v13 = vadd.f32 1.0, %v812_v12 }
0x1373   :  { %813 = vrcp.f32 %v696_v13  ;;  %v708_v17 = vand.u32 2147483648, %v696_v13  ;;  %v706_v19 = vand.u32 2147483647, %v696_v13  ;;  %vm702_vm5 = vweird.f32 %v696_v13 }
0x1375   :  { %v709_v23 = vor.u32 1.1754944e-38, %v708_v17  ;;  %vm707_vm8 = vcmp.eq.f32.partialorder %v706_v19, 8.507059e+37 }
0x1379   :  { %v814_v14 = vpop.eup %813 }
0x137a   :  { %v698_v15 = vmul.f32 %v814_v14, %v696_v13  ;;  %vm703_vm3 = vweird.f32 %v814_v14 }
0x137b   :  { %vm704_vm7 = vmor %vm702_vm5, %vm703_vm3 }
0x137c   :  { %v699_v16 = vsub.f32 1.0, %v698_v15 }
0x137e   :  { %v700_v18 = vmul.f32 %v814_v14, %v699_v16 }
0x1380   :  { %v701_v20 = vadd.f32 %v814_v14, %v700_v18 }
0x1382   :  { %v705_v24 = vsel %vm704_vm7, %v814_v14, %v701_v20 }
0x1383   :  { %v710_v25 = vsel %vm707_vm8, %v709_v23, %v705_v24 }
0x1384   :  { %713 = vst.msk [vmem:[%s1001_s6 - $0x6] sm:$0xc0] %vm712_vm6, %v710_v25 }
0x1385   :  { %718 = vsyncpa [#allocation4], 1 }

</bundles_post_ra>
